<compile_context>
chip_gen: v7x
topology: tpu7x:2x2x1
jax: 0.10.0
libtpu: 0.0.40
codegen_flags: <defaults>
</compile_context>

<pallas_src>
import jax
import jax.numpy as jnp
from jax import lax
from jax.experimental import pallas as pl
from jax.experimental.pallas import tpu as pltpu  # noqa: F401  (TPU backend)

SIGMA_1 = 0.1
SIGMA_2 = 0.003
LAMDA = 0.03


def _softplus(x):
    # Stable log(1 + exp(x)) = max(x, 0) + log(1 + exp(-|x|)); exp arg <= 0 so no overflow.
    return jnp.maximum(x, 0.0) + jnp.log(1.0 + jnp.exp(-jnp.abs(x)))


def bnn_mc_kernel(
    xT_ref,        # (D, B)        input, batch on the lane axis
    w1_ref,        # (2, H, D)     [w1_mu, w1_rho]
    p_ref,         # (2, H, 3)     [mu, rho] x columns [b1, w2, b2(row 0)]
    eps_w1_ref,    # (S, H, D)     per-sample eps for W1
    eps_p_ref,     # (S, H, 3)     per-sample eps, columns [b1, w2, b2(row 0)]
    out_ref,       # (S, B)        one lane-oriented output slab
):
    S, H, D = eps_w1_ref.shape
    B = xT_ref.shape[1]

    xT = xT_ref[...]                                              # (D, B)

    # softplus of rho computed ONCE for all S samples (hoisted out of per-sample work).
    w1_mu = w1_ref[0]                                             # (H, D)
    w1_sigma = _softplus(w1_ref[1])                               # (H, D)
    p_mu = p_ref[0]                                               # (H, 3)
    p_sigma = _softplus(p_ref[1])                                 # (H, 3)

    # --- hidden layer: sample all S weight matrices, single MXU contraction ---
    # (H % 8 == 0 at demo sizes, so the (S,H,D)->(S*H,D) relayout is tile-aligned.)
    w1_all = w1_mu[None] + w1_sigma[None] * eps_w1_ref[...]       # (S, H, D)
    w1_2d = w1_all.reshape(S * H, D)
    h = lax.dot_general(
        w1_2d, xT,
        dimension_numbers=(((1,), (0,)), ((), ())),               # (S*H, D) @ (D, B)
        preferred_element_type=jnp.float32,
    ).reshape(S, H, B)

    # --- small parameters (b1, w2, b2) sampled for all S at once ---
    p_all = p_mu[None] + p_sigma[None] * eps_p_ref[...]           # (S, H, 3)
    b1 = p_all[:, :, 0:1]                                         # (S, H, 1)
    w2 = p_all[:, :, 1:2]                                         # (S, H, 1)
    b2 = p_all[:, 0:1, 2:3]                                       # (S, 1, 1)

    h = jnp.maximum(h + b1, 0.0)                                  # (S, H, B)

    # --- output layer (out_features == 1): VPU multiply + sublane reduce, no MXU ---
    y = jnp.sum(h * w2, axis=1) + b2[:, 0, :]                     # (S, B)

    out_ref[...] = y.astype(out_ref.dtype)


def bnn_forward_mc(x, params, eps):
    """x: (B, D) float32. params in PyTorch layout, eps with leading MC-sample axis S.

    Returns (S, B, 1): S independent reparameterized forward passes.
    """
    B, D = x.shape
    H = params["w1_mu"].shape[0]
    S = eps["w1"].shape[0]

    # ---- wrapper-side layout plumbing / slab packing (tiny, done once per call) ----
    xT = jnp.asarray(x, jnp.float32).T                            # (D, B)

    w1_slab = jnp.stack([params["w1_mu"], params["w1_rho"]], axis=0)       # (2, H, D)

    b1_mu = params["b1_mu"].reshape(H)
    b1_rho = params["b1_rho"].reshape(H)
    w2_mu = params["w2_mu"].reshape(H)
    w2_rho = params["w2_rho"].reshape(H)
    b2_mu = params["b2_mu"].reshape(())
    b2_rho = params["b2_rho"].reshape(())

    # b2 scalars live in row 0 of column 2; remaining rows are never read.
    b2_mu_col = jnp.zeros((H,), jnp.float32).at[0].set(b2_mu)
    b2_rho_col = jnp.zeros((H,), jnp.float32).at[0].set(b2_rho)
    p_mu = jnp.stack([b1_mu, w2_mu, b2_mu_col], axis=1)                    # (H, 3)
    p_rho = jnp.stack([b1_rho, w2_rho, b2_rho_col], axis=1)                # (H, 3)
    p_slab = jnp.stack([p_mu, p_rho], axis=0)                              # (2, H, 3)

    eps_w1 = eps["w1"].astype(jnp.float32)                                 # (S, H, D)
    eps_b1 = eps["b1"].reshape(S, H)
    eps_w2 = eps["w2"].reshape(S, H)
    eps_b2 = eps["b2"].reshape(S)
    eps_b2_col = jnp.zeros((S, H), jnp.float32).at[:, 0].set(eps_b2)
    eps_p = jnp.stack([eps_b1, eps_w2, eps_b2_col], axis=2)                # (S, H, 3)

    # Single invocation, no grid: all operands (~30 kB) live whole-array in VMEM.
    y = pl.pallas_call(
        bnn_mc_kernel,
        out_shape=jax.ShapeDtypeStruct((S, B), jnp.float32),
    )(xT, w1_slab, p_slab, eps_w1, eps_p)

    return y[..., None]                                                    # (S, B, 1)


# ----------------------------- parameter / eps construction -----------------------------

def scale_mixture_sample(key, shape):
    """JAX analogue of ScaleMixtureGaussian.sample: each element is N(0, sigma1)
    with prob LAMDA, else N(0, sigma2)."""
    k_sel, k_norm = jax.random.split(key)
    sel = jax.random.bernoulli(k_sel, p=LAMDA, shape=shape)
    sigma = jnp.where(sel, SIGMA_1, SIGMA_2).astype(jnp.float32)
    return sigma * jax.random.normal(k_norm, shape, dtype=jnp.float32)


def make_params(key, input_size, hidden_units):
    ks = jax.random.split(key, 8)
    return {
        "w1_mu": scale_mixture_sample(ks[0], (hidden_units, input_size)),
        "w1_rho": scale_mixture_sample(ks[1], (hidden_units, input_size)),
        "b1_mu": scale_mixture_sample(ks[2], (hidden_units,)),
        "b1_rho": scale_mixture_sample(ks[3], (hidden_units,)),
        "w2_mu": scale_mixture_sample(ks[4], (1, hidden_units)),
        "w2_rho": scale_mixture_sample(ks[5], (1, hidden_units)),
        "b2_mu": scale_mixture_sample(ks[6], (1,)),
        "b2_rho": scale_mixture_sample(ks[7], (1,)),
    }


def make_eps(key, input_size, hidden_units, num_samples):
    ks = jax.random.split(key, 4)
    return {
        "w1": jax.random.normal(ks[0], (num_samples, hidden_units, input_size), jnp.float32),
        "b1": jax.random.normal(ks[1], (num_samples, hidden_units), jnp.float32),
        "w2": jax.random.normal(ks[2], (num_samples, 1, hidden_units), jnp.float32),
        "b2": jax.random.normal(ks[3], (num_samples, 1), jnp.float32),
    }


def reference_forward(x, params, eps_s):
    """Pure-JAX reference for ONE MC sample, mirroring the PyTorch BNN.forward."""
    w1 = params["w1_mu"] + _softplus(params["w1_rho"]) * eps_s["w1"]
    b1 = params["b1_mu"] + _softplus(params["b1_rho"]) * eps_s["b1"]
    h = jnp.maximum(x @ w1.T + b1, 0.0)
    w2 = params["w2_mu"] + _softplus(params["w2_rho"]) * eps_s["w2"]
    b2 = params["b2_mu"] + _softplus(params["b2_rho"]) * eps_s["b2"]
    return h @ w2.T + b2


if __name__ == "__main__":
    input_size = 16
    hidden_units = 32
    batch = 8
    num_samples = 4

    root = jax.random.PRNGKey(0)
    k_param, k_eps, k_x = jax.random.split(root, 3)

    params = make_params(k_param, input_size, hidden_units)
    eps = make_eps(k_eps, input_size, hidden_units, num_samples)
    x = jax.random.normal(k_x, (batch, input_size), dtype=jnp.float32)

    y = bnn_forward_mc(x, params, eps)
    y = jax.block_until_ready(y)
    assert y.shape == (num_samples, batch, 1)

    for s in range(num_samples):
        eps_s = {k: v[s] for k, v in eps.items()}
        y_ref = reference_forward(x, params, eps_s)
        assert y_ref.shape == (batch, 1)
        assert jnp.allclose(y[s], y_ref, atol=1e-4, rtol=1e-5), (
            "max abs err", float(jnp.max(jnp.abs(y[s] - y_ref))))

    print("KERNEL_OK")
</pallas_src>

<mosaic_0001>
module attributes {stable_mosaic.version = 11 : i64} {
  func.func @bnn_mc_kernel(%arg0: memref<16x8xf32, #tpu.memory_space<vmem>>, %arg1: memref<2x32x16xf32, #tpu.memory_space<vmem>>, %arg2: memref<2x32x3xf32, #tpu.memory_space<vmem>>, %arg3: memref<4x32x16xf32, #tpu.memory_space<vmem>>, %arg4: memref<4x32x3xf32, #tpu.memory_space<vmem>>, %arg5: memref<4x8xf32, #tpu.memory_space<vmem>>) attributes {dimension_semantics = [], scalar_prefetch = 0 : i64, scratch_operands = 0 : i64, tpu.core_type = #tpu.core_type<tc>} {
    %c0 = arith.constant 0 : index
    %c0_0 = arith.constant 0 : index
    %0 = vector.load %arg0[%c0, %c0_0] : memref<16x8xf32, #tpu.memory_space<vmem>>, vector<16x8xf32>
    %c0_1 = arith.constant 0 : index
    %c0_2 = arith.constant 0 : index
    %c0_3 = arith.constant 0 : index
    %1 = vector.load %arg1[%c0_1, %c0_2, %c0_3] : memref<2x32x16xf32, #tpu.memory_space<vmem>>, vector<1x32x16xf32>
    %2 = vector.shape_cast %1 : vector<1x32x16xf32> to vector<32x16xf32>
    %c1 = arith.constant 1 : index
    %c0_4 = arith.constant 0 : index
    %c0_5 = arith.constant 0 : index
    %3 = vector.load %arg1[%c1, %c0_4, %c0_5] : memref<2x32x16xf32, #tpu.memory_space<vmem>>, vector<1x32x16xf32>
    %4 = vector.shape_cast %3 : vector<1x32x16xf32> to vector<32x16xf32>
    %cst = arith.constant 0.000000e+00 : f32
    %5 = vector.broadcast %cst : f32 to vector<32x16xf32>
    %6 = arith.maximumf %4, %5 : vector<32x16xf32>
    %7 = math.absf %4 : vector<32x16xf32>
    %cst_6 = arith.constant 0.000000e+00 : f32
    %8 = vector.broadcast %cst_6 : f32 to vector<32x16xf32>
    %9 = arith.subf %8, %7 : vector<32x16xf32>
    %10 = math.exp %9 : vector<32x16xf32>
    %cst_7 = arith.constant 1.000000e+00 : f32
    %11 = vector.broadcast %cst_7 : f32 to vector<32x16xf32>
    %12 = arith.addf %11, %10 : vector<32x16xf32>
    %13 = math.log %12 : vector<32x16xf32>
    %14 = arith.addf %6, %13 : vector<32x16xf32>
    %c0_8 = arith.constant 0 : index
    %c0_9 = arith.constant 0 : index
    %c0_10 = arith.constant 0 : index
    %15 = vector.load %arg2[%c0_8, %c0_9, %c0_10] : memref<2x32x3xf32, #tpu.memory_space<vmem>>, vector<1x32x3xf32>
    %16 = vector.shape_cast %15 : vector<1x32x3xf32> to vector<32x3xf32>
    %c1_11 = arith.constant 1 : index
    %c0_12 = arith.constant 0 : index
    %c0_13 = arith.constant 0 : index
    %17 = vector.load %arg2[%c1_11, %c0_12, %c0_13] : memref<2x32x3xf32, #tpu.memory_space<vmem>>, vector<1x32x3xf32>
    %18 = vector.shape_cast %17 : vector<1x32x3xf32> to vector<32x3xf32>
    %cst_14 = arith.constant 0.000000e+00 : f32
    %19 = vector.broadcast %cst_14 : f32 to vector<32x3xf32>
    %20 = arith.maximumf %18, %19 : vector<32x3xf32>
    %21 = math.absf %18 : vector<32x3xf32>
    %cst_15 = arith.constant 0.000000e+00 : f32
    %22 = vector.broadcast %cst_15 : f32 to vector<32x3xf32>
    %23 = arith.subf %22, %21 : vector<32x3xf32>
    %24 = math.exp %23 : vector<32x3xf32>
    %cst_16 = arith.constant 1.000000e+00 : f32
    %25 = vector.broadcast %cst_16 : f32 to vector<32x3xf32>
    %26 = arith.addf %25, %24 : vector<32x3xf32>
    %27 = math.log %26 : vector<32x3xf32>
    %28 = arith.addf %20, %27 : vector<32x3xf32>
    %29 = vector.shape_cast %2 : vector<32x16xf32> to vector<1x32x16xf32>
    %30 = vector.shape_cast %14 : vector<32x16xf32> to vector<1x32x16xf32>
    %c0_17 = arith.constant 0 : index
    %c0_18 = arith.constant 0 : index
    %c0_19 = arith.constant 0 : index
    %31 = vector.load %arg3[%c0_17, %c0_18, %c0_19] : memref<4x32x16xf32, #tpu.memory_space<vmem>>, vector<4x32x16xf32>
    %32 = vector.broadcast %30 : vector<1x32x16xf32> to vector<4x32x16xf32>
    %33 = arith.mulf %32, %31 : vector<4x32x16xf32>
    %34 = vector.broadcast %29 : vector<1x32x16xf32> to vector<4x32x16xf32>
    %35 = arith.addf %34, %33 : vector<4x32x16xf32>
    %36 = vector.shape_cast %35 : vector<4x32x16xf32> to vector<128x16xf32>
    %cst_20 = arith.constant dense<0.000000e+00> : vector<128x8xf32>
    %37 = tpu.matmul %36, %0, %cst_20 {dimension_numbers = #tpu.dot_dimension_numbers<[1], [0], [0], [1], [0, 0, 1, 1], [], []>} : vector<128x16xf32>, vector<16x8xf32>, vector<128x8xf32> -> vector<128x8xf32>
    %38 = vector.shape_cast %37 : vector<128x8xf32> to vector<4x32x8xf32>
    %39 = vector.shape_cast %16 : vector<32x3xf32> to vector<1x32x3xf32>
    %40 = vector.shape_cast %28 : vector<32x3xf32> to vector<1x32x3xf32>
    %c0_21 = arith.constant 0 : index
    %c0_22 = arith.constant 0 : index
    %c0_23 = arith.constant 0 : index
    %41 = vector.load %arg4[%c0_21, %c0_22, %c0_23] : memref<4x32x3xf32, #tpu.memory_space<vmem>>, vector<4x32x3xf32>
    %42 = vector.broadcast %40 : vector<1x32x3xf32> to vector<4x32x3xf32>
    %43 = arith.mulf %42, %41 : vector<4x32x3xf32>
    %44 = vector.broadcast %39 : vector<1x32x3xf32> to vector<4x32x3xf32>
    %45 = arith.addf %44, %43 : vector<4x32x3xf32>
    %46 = vector.extract_strided_slice %45 {offsets = [0, 0, 0], sizes = [4, 32, 1], strides = [1, 1, 1]} : vector<4x32x3xf32> to vector<4x32x1xf32>
    %47 = vector.extract_strided_slice %45 {offsets = [0, 0, 1], sizes = [4, 32, 1], strides = [1, 1, 1]} : vector<4x32x3xf32> to vector<4x32x1xf32>
    %48 = vector.extract_strided_slice %45 {offsets = [0, 0, 2], sizes = [4, 1, 1], strides = [1, 1, 1]} : vector<4x32x3xf32> to vector<4x1x1xf32>
    %49 = vector.broadcast %46 : vector<4x32x1xf32> to vector<4x32x8xf32>
    %50 = arith.addf %38, %49 : vector<4x32x8xf32>
    %cst_24 = arith.constant 0.000000e+00 : f32
    %51 = vector.broadcast %cst_24 : f32 to vector<4x32x8xf32>
    %52 = arith.maximumf %50, %51 : vector<4x32x8xf32>
    %53 = vector.broadcast %47 : vector<4x32x1xf32> to vector<4x32x8xf32>
    %54 = arith.mulf %52, %53 : vector<4x32x8xf32>
    %cst_25 = arith.constant dense<0.000000e+00> : vector<4x8xf32>
    %55 = vector.multi_reduction <add>, %54, %cst_25 [1] : vector<4x32x8xf32> to vector<4x8xf32>
    %56 = vector.shape_cast %48 : vector<4x1x1xf32> to vector<4x1xf32>
    %57 = vector.broadcast %56 : vector<4x1xf32> to vector<4x8xf32>
    %58 = arith.addf %55, %57 : vector<4x8xf32>
    %c0_26 = arith.constant 0 : index
    %c0_27 = arith.constant 0 : index
    %59 = vector.load %arg5[%c0_26, %c0_27] : memref<4x8xf32, #tpu.memory_space<vmem>>, vector<4x8xf32>
    tpu.vector_store %arg5[%c0_26, %c0_27], %58 {strides = array<i32>} : memref<4x8xf32, #tpu.memory_space<vmem>>, vector<4x8xf32>,
    return
  }
}

</mosaic_0001>

<bundles_post_ra>
// kernel: tpu_custom_call.1
= control target key start
LH: loop header
LB: loop body
LE: loop exit
PB: predicated region body
PF: predicated region fallthrough
CT: control target
= control target key end

     0   :  { %v840_v4 = vmov 0   ;;  %s1191_s0 = inlined_call_operand.vmem [shape: f32[16,8], index: 0, kind: input, shape index: {}]   ;;  %s1192_s1 = inlined_call_operand.vmem [shape: f32[2,32,16], index: 1, kind: input, shape index: {}]   ;;  %s1193_s2 = inlined_call_operand.vmem [shape: f32[2,32,3], index: 2, kind: input, shape index: {}]   ;;  %s1194_s3 = inlined_call_operand.vmem [shape: f32[4,32,16], index: 3, kind: input, shape index: {}]   ;;  %s1195_s4 = inlined_call_operand.vmem [shape: f32[4,32,3], index: 4, kind: input, shape index: {}]   ;;  %s1196_s5 = inlined_call_operand.hbm [shape: f32[4,8], index: 5, kind: output, shape index: {}]  }
   0x1   :  { %v21_v0 = vld [vmem:[%s1191_s0] sm:$0xff]  ;;  %v22_v1 = vld [vmem:[%s1191_s0 + $0x8] sm:$0xff]  ;;  %779 = vset.pattern.permute.xlu1 %v840_v4  ;;  %778 = vset.pattern.permute.xlu0 %v840_v4  ;;  %v895_v8 = vld [vmem:[%s1192_s1 + $0x30] sm:$0xff] }
   0x2   :  { %v768_v2 = vpack.c.bf16 %v22_v1, %v21_v0  ;;  %v883_v3 = vld [vmem:[%s1192_s1 + $0x20] sm:$0xff]  ;;  %v889_v6 = vld [vmem:[%s1192_s1 + $0x28] sm:$0xff]  ;;  %v38_v10 = vand.u32 2147483647, %v895_v8  ;;  %v901_v12 = vld [vmem:[%s1193_s2 + $0x30] sm:$0xff] }
   0x3   :  { %v36_v5 = vand.u32 2147483647, %v883_v3  ;;  %v37_v7 = vand.u32 2147483647, %v889_v6  ;;  %v83_v15 = vand.u32 2147483647, %v901_v12 }
   0x4   :  { %769 = vmatprep.subr.bf16.mxu0 %v768_v2  ;;  %772 = vmatprep.subr.bf16.mxu1 %v768_v2  ;;  %v42_v14 = vsub.f32 0.0, %v38_v10  ;;  %v907_v17 = vld [vmem:[%s1192_s1 + $0x38] sm:$0xff]  ;;  %v919_v26 = vld [vmem:[%s1193_s2 + $0x28] sm:$0xff]  ;;  %v925_v31 = vld [vmem:[%s1193_s2 + $0x20] sm:$0xff] }
   0x5   :  { %771 = vmatpush3.bf16.msra.mxu0 %v768_v2  ;;  %773 = vmatpush3.bf16.msra.mxu1 %v768_v2  ;;  %v40_v9 = vsub.f32 0.0, %v36_v5  ;;  %v41_v11 = vsub.f32 0.0, %v37_v7  ;;  %v87_v19 = vsub.f32 0.0, %v83_v15  ;;  %v39_v20 = vand.u32 2147483647, %v907_v17  ;;  %v913_v21 = vld [vmem:[%s1193_s2 + $0x38] sm:$0xff] }
   0x6   :  { %v48_v18 = vmul.f32 1.442695, %v42_v14  ;;  %v84_v23 = vand.u32 2147483647, %v913_v21  ;;  %v82_v28 = vand.u32 2147483647, %v919_v26 }
   0x7   :  { %v44_v13 = vmul.f32 1.442695, %v40_v9  ;;  %v46_v16 = vmul.f32 1.442695, %v41_v11  ;;  %v93_v22 = vmul.f32 1.442695, %v87_v19 }
   0x8   :  { %v43_v24 = vsub.f32 0.0, %v39_v20  ;;  %v88_v25 = vsub.f32 0.0, %v84_v23  ;;  %v86_v30 = vsub.f32 0.0, %v82_v28  ;;  %v81_v32 = vand.u32 2147483647, %v925_v31 }
   0x9   :  { %784 = vpow2.f32 %v44_v13 }
   0xa   :  { %786 = vpow2.f32 %v46_v16  ;;  %v50_v27 = vmul.f32 1.442695, %v43_v24  ;;  %v95_v29 = vmul.f32 1.442695, %v88_v25  ;;  %v91_v33 = vmul.f32 1.442695, %v86_v30 }
   0xb   :  { %788 = vpow2.f32 %v48_v18  ;;  %v85_v35 = vsub.f32 0.0, %v81_v32 }
   0xc   :  { %790 = vpow2.f32 %v93_v22 }
   0xd   :  { %792 = vpow2.f32 %v50_v27 }
   0xe   :  { %794 = vpow2.f32 %v95_v29 }
   0xf   :  { %796 = vpow2.f32 %v91_v33 }
  0x13   :  { %v785_v34 = vpop.eup %784 }
  0x14   :  { %v787_v36 = vpop.eup %786  ;;  %v52_v37 = vadd.f32 1.0, %v785_v34 }
  0x15   :  { %10 = vsyncpa [#allocation3], 0  ;;  %v789_v38 = vpop.eup %788  ;;  %v53_v39 = vadd.f32 1.0, %v787_v36  ;;  %v89_v40 = vmul.f32 1.442695, %v85_v35  ;;  %v32_v49 = vmax.f32 %v883_v3, 0.0 }
  0x16   :  { %798 = vlog2.f32 %v52_v37  ;;  %v54_v41 = vadd.f32 1.0, %v789_v38  ;;  %v791_v42 = vpop.eup %790  ;;  %v33_v52 = vmax.f32 %v889_v6, 0.0  ;;  %v34_v55 = vmax.f32 %v895_v8, 0.0  ;;  %v113_v57 = vld [vmem:[%s1194_s3] sm:$0xff]  ;;  %v114_v62 = vld [vmem:[%s1194_s3 + $0x8] sm:$0xff]  ;;  %v115_v5 = vld [vmem:[%s1194_s3 + $0x10] sm:$0xff] }
  0x17   :  { %800 = vlog2.f32 %v53_v39  ;;  %v99_v43 = vadd.f32 1.0, %v791_v42  ;;  %v793_v44 = vpop.eup %792  ;;  %v121_v58 = vld [vmem:[%s1194_s3 + $0x40] sm:$0xff]  ;;  %vm161_vm0 = vcmask 130048   ;;  %v122_v63 = vld [vmem:[%s1194_s3 + $0x48] sm:$0xff]  ;;  %v123_v6 = vld [vmem:[%s1194_s3 + $0x50] sm:$0xff]  ;;  %v79_v7 = vmax.f32 %v901_v12, 0.0 }
  0x18   :  { %802 = vlog2.f32 %v54_v41  ;;  %v795_v45 = vpop.eup %794  ;;  %v55_v46 = vadd.f32 1.0, %v793_v44  ;;  %v117_v1 = vld [vmem:[%s1194_s3 + $0x20] sm:$0xff]  ;;  %v35_v8 = vmax.f32 %v907_v17, 0.0  ;;  %v80_v9 = vmax.f32 %v913_v21, 0.0  ;;  %v961_v13 = vld [vmem:[%s1192_s1 + $0x8] sm:$0xff]  ;;  %v966_v19 = vld [vmem:[%s1192_s1 + $0x10] sm:$0xff] }
  0x19   :  { %804 = vpow2.f32 %v89_v40  ;;  %v100_v47 = vadd.f32 1.0, %v795_v45  ;;  %v797_v48 = vpop.eup %796  ;;  %v23_v3 = vld [vmem:[%s1192_s1] sm:$0xff]  ;;  %v357_v27 = vld [vmem:[%s1195_s4 + $0x10] sm:$0xff]  ;;  %v118_v34 = vld [vmem:[%s1194_s3 + $0x28] sm:$0xff]  ;;  %vm595_vm1 = vcmask 64512   ;;  %vm673_vm2 = vcmask 1041409  }
  0x1a   :  { %806 = vlog2.f32 %v99_v43  ;;  %v98_v50 = vadd.f32 1.0, %v797_v48  ;;  %v125_v17 = vld [vmem:[%s1194_s3 + $0x60] sm:$0xff]  ;;  %v126_v35 = vld [vmem:[%s1194_s3 + $0x68] sm:$0xff]  ;;  %v991_v38 = vld [vmem:[%s1193_s2 + $0x10] sm:$0xff]  ;;  %vm676_vm3 = vcmask 1042434   ;;  %vm679_vm4 = vcmask 1043459  }
  0x1b   :  { %808 = vlog2.f32 %v55_v46  ;;  %v116_v39 = vld [vmem:[%s1194_s3 + $0x18] sm:$0xff]  ;;  %v119_v46 = vld [vmem:[%s1194_s3 + $0x30] sm:$0xff]  ;;  %vm682_vm5 = vcmask 60416  }
  0x1c   :  { %810 = vlog2.f32 %v100_v47  ;;  %v124_v40 = vld [vmem:[%s1194_s3 + $0x58] sm:$0xff]  ;;  %v127_v47 = vld [vmem:[%s1194_s3 + $0x70] sm:$0xff] }
  0x1d   :  { %812 = vlog2.f32 %v98_v50  ;;  %v358_v45 = vld [vmem:[%s1195_s4 + $0x18] sm:$0xff] }
  0x20   :  { %v799_v51 = vpop.eup %798 }
  0x21   :  { %v801_v53 = vpop.eup %800  ;;  %v57_v54 = vmul.f32 0.6931472, %v799_v51 }
  0x22   :  { %v803_v56 = vpop.eup %802  ;;  %v59_v59 = vmul.f32 0.6931472, %v801_v53  ;;  %v78_v53 = vmax.f32 %v919_v26, 0.0  ;;  %v120_v26 = vld [vmem:[%s1194_s3 + $0x38] sm:$0xff] }
  0x23   :  { %v805_v60 = vpop.eup %804  ;;  %v64_v61 = vadd.f32 %v57_v54, %v32_v49  ;;  %v61_v0 = vmul.f32 0.6931472, %v803_v56  ;;  %v26_v49 = vld [vmem:[%s1192_s1 + $0x18] sm:$0xff] }
  0x24   :  { %v807_v2 = vpop.eup %806  ;;  %v65_v4 = vadd.f32 %v59_v59, %v33_v52  ;;  %v97_v20 = vadd.f32 1.0, %v805_v60 }
  0x25   :  { %v129_v10 = vmul.f32 %v113_v57, %v64_v61  ;;  %v137_v11 = vmul.f32 %v121_v58, %v64_v61  ;;  %v66_v14 = vadd.f32 %v61_v0, %v34_v55  ;;  %v106_v15 = vmul.f32 0.6931472, %v807_v2  ;;  %v809_v21 = vpop.eup %808  ;;  %v1025_v58 = vld [vmem:[%s1193_s2 + $0x18] sm:$0xff] }
  0x26   :  { %v130_v16 = vmul.f32 %v114_v62, %v65_v4  ;;  %v138_v18 = vmul.f32 %v122_v63, %v65_v4  ;;  %v133_v12 = vmul.f32 %v117_v1, %v64_v61  ;;  %v811_v28 = vpop.eup %810  ;;  %v63_v33 = vmul.f32 0.6931472, %v809_v21  ;;  %v128_v63 = vld [vmem:[%s1194_s3 + $0x78] sm:$0xff] }
  0x27   :  { %v145_v22 = vadd.f32 %v129_v10, %v23_v3  ;;  %v153_v23 = vadd.f32 %v137_v11, %v23_v3  ;;  %v131_v24 = vmul.f32 %v115_v5, %v66_v14  ;;  %v139_v25 = vmul.f32 %v123_v6, %v66_v14  ;;  %v813_v48 = vpop.eup %812  ;;  %v360_v6 = vld [vmem:[%s1195_s4 + $0x28] sm:$0xff] }
  0x28   :  { %v146_v29 = vadd.f32 %v130_v16, %v961_v13  ;;  %v154_v30 = vadd.f32 %v138_v18, %v961_v13  ;;  %v976_v32 = vadd.f32 %v106_v15, %v79_v7  ;;  %v141_v41 = vmul.f32 %v125_v17, %v64_v61  ;;  %v362_v7 = vld [vmem:[%s1195_s4 + $0x38] sm:$0xff] }
  0x29   :  { %744 = vmatprep.mubr.msk.f32.mxu0 %vm161_vm0, %v145_v22  ;;  %756 = vmatprep.mubr.msk.f32.mxu1 %vm161_vm0, %v153_v23  ;;  %v147_v36 = vadd.f32 %v131_v24, %v966_v19  ;;  %v155_v37 = vadd.f32 %v139_v25, %v966_v19  ;;  %v108_v42 = vmul.f32 0.6931472, %v811_v28  ;;  %v67_v44 = vadd.f32 %v63_v33, %v35_v8  ;;  %v355_v23 = vld [vmem:[%s1195_s4] sm:$0xff]  ;;  %v356_v25 = vld [vmem:[%s1195_s4 + $0x8] sm:$0xff]  ;;  %v366_v28 = vld [vmem:[%s1195_s4 + $0x58] sm:$0xff] }
  0x2a   :  { %745 = vmatmul.mubr.msk.f32.vlgmr.msra.gmra.mrb[0].mxu0 %vm161_vm0, %v146_v29  ;;  %757 = vmatmul.mubr.msk.f32.vlgmr.msra.gmra.mrb[0].mxu1 %vm161_vm0, %v154_v30  ;;  %v373_v43 = vmul.f32 %v357_v27, %v976_v32  ;;  %814 = vlog2.f32 %v97_v20  ;;  %v134_v51 = vmul.f32 %v118_v34, %v65_v4  ;;  %v142_v52 = vmul.f32 %v126_v35, %v65_v4  ;;  %v68_v29 = vld [vmem:[%s1193_s2] sm:$0xff] }
  0x2b   :  { %747 = vmatprep.mubr.msk.f32.mxu0 %vm161_vm0, %v147_v36  ;;  %759 = vmatprep.mubr.msk.f32.mxu1 %vm161_vm0, %v155_v37  ;;  %v1016_v50 = vadd.f32 %v108_v42, %v80_v9  ;;  %v132_v55 = vmul.f32 %v116_v39, %v67_v44  ;;  %v140_v56 = vmul.f32 %v124_v40, %v67_v44  ;;  %v104_v2 = vmul.f32 0.6931472, %v813_v48  ;;  %v359_v36 = vld [vmem:[%s1195_s4 + $0x20] sm:$0xff]  ;;  %v368_v39 = vld [vmem:[%s1195_s4 + $0x68] sm:$0xff] }
  0x2c   :  { %v1020_v54 = vadd.f32 %v373_v43, %v991_v38  ;;  %v149_v57 = vadd.f32 %v133_v12, %v23_v3  ;;  %v157_v59 = vadd.f32 %v141_v41, %v23_v3  ;;  %v135_v61 = vmul.f32 %v119_v46, %v66_v14  ;;  %v364_v12 = vld [vmem:[%s1195_s4 + $0x48] sm:$0xff]  ;;  %v363_v48 = vld [vmem:[%s1195_s4 + $0x40] sm:$0xff] }
  0x2d   :  { %v374_v60 = vmul.f32 %v358_v45, %v1016_v50  ;;  %v143_v62 = vmul.f32 %v127_v47, %v66_v14  ;;  %v148_v0 = vadd.f32 %v132_v55, %v26_v49  ;;  %v156_v1 = vadd.f32 %v140_v56, %v26_v49  ;;  %v69_v14 = vld [vmem:[%s1193_s2 + $0x8] sm:$0xff] }
  0x2e   :  { %415 = vperm.xlu1 %779, %v1020_v54   ;;  %v150_v3 = vadd.f32 %v134_v51, %v961_v13  ;;  %v158_v5 = vadd.f32 %v142_v52, %v961_v13  ;;  %v110_v8 = vadd.f32 %v104_v2, %v78_v53  ;;  %v136_v9 = vmul.f32 %v120_v26, %v67_v44  ;;  %v365_v52 = vld [vmem:[%s1195_s4 + $0x50] sm:$0xff] }
  0x2f   :  { %v1036_v4 = vadd.f32 %v374_v60, %v1025_v58  ;;  %748 = vmatmul.mubr.msk.f32.gmra.mrb[2].mxu0 %vm161_vm0, %v148_v0  ;;  %760 = vmatmul.mubr.msk.f32.gmra.mrb[2].mxu1 %vm161_vm0, %v156_v1  ;;  %v144_v10 = vmul.f32 %v128_v63, %v67_v44  ;;  %v151_v11 = vadd.f32 %v135_v61, %v966_v19  ;;  %v77_v18 = vmax.f32 %v925_v31, 0.0  ;;  %v361_v44 = vld [vmem:[%s1195_s4 + $0x30] sm:$0xff]  ;;  %v370_v63 = vld [vmem:[%s1195_s4 + $0x78] sm:$0xff] }
  0x30   :  { %750 = vmatprep.mubr.msk.f32.mxu0 %vm161_vm0, %v149_v57  ;;  %762 = vmatprep.mubr.msk.f32.mxu1 %vm161_vm0, %v157_v59  ;;  %v159_v13 = vadd.f32 %v143_v62, %v966_v19  ;;  %v376_v15 = vmul.f32 %v360_v6, %v110_v8  ;;  %v378_v16 = vmul.f32 %v362_v7, %v1016_v50  ;;  %v841_v56 = vmov 1   ;;  %v367_v57 = vld [vmem:[%s1195_s4 + $0x60] sm:$0xff]  ;;  %v369_v61 = vld [vmem:[%s1195_s4 + $0x70] sm:$0xff]  ;;  %s843_s4 = smov [#allocation2]  }
  0x31   :  { %v152_v20 = vadd.f32 %v136_v9, %v26_v49  ;;  %v160_v21 = vadd.f32 %v144_v10, %v26_v49  ;;  %v380_v24 = vmul.f32 %v364_v12, %v110_v8  ;;  %v372_v33 = vmul.f32 %v356_v25, %v110_v8  ;;  %s690_s10 = sshll.u32 %s843_s4, 4  ;;  %s691_s10 = int_to_ptr.vmem [resolvable:$true] %s690_s10 }
  0x32   :  { %420 = vperm.xlu1 %779, %v1036_v4   ;;  %v1063_v19 = vadd.f32 %v376_v15, %v69_v14  ;;  %v1069_v31 = vadd.f32 %v378_v16, %v1025_v58  ;;  %v382_v35 = vmul.f32 %v366_v28, %v1016_v50  ;;  %v384_v43 = vmul.f32 %v368_v39, %v110_v8  ;;  %s816_s3 = scalar_lea.vmem %s691_s10, 64  ;;  %p821_p1 = scmp.lt.s32.totalorder %s691_s10, %s691_s10 }
  0x33   :  { %751 = vmatmul.mubr.msk.f32.gmra.mrb[4].mxu0 %vm161_vm0, %v150_v3  ;;  %763 = vmatmul.mubr.msk.f32.gmra.mrb[4].mxu1 %vm161_vm0, %v158_v5  ;;  %v396_v34 = vadd.f32 %v380_v24, %v69_v14  ;;  %v388_v40 = vadd.f32 %v372_v33, %v69_v14  ;;  %v377_v46 = vmul.f32 %v361_v44, %v976_v32  ;;  %p817_p0 = scmp.ne.s32.totalorder %s691_s10, %s816_s3  ;;  %p822_p2 = scmp.lt.s32.totalorder %s816_s3, %s816_s3 }
  0x34   :  { %v815_v17 = vpop.eup %814  ;;  %753 = vmatprep.mubr.msk.f32.mxu0 %vm161_vm0, %v151_v11  ;;  %765 = vmatprep.mubr.msk.f32.mxu1 %vm161_vm0, %v159_v13  ;;  %v398_v42 = vadd.f32 %v382_v35, %v1025_v58  ;;  %v400_v47 = vadd.f32 %v384_v43, %v69_v14  ;;  %v381_v55 = vmul.f32 %v365_v52, %v976_v32 }
  0x35   :  { %v102_v22 = vmul.f32 0.6931472, %v815_v17  ;;  %v393_v49 = vadd.f32 %v377_v46, %v991_v38  ;;  %v385_v26 = vmul.f32 %v369_v61, %v976_v32  ;;  %v386_v1 = vmul.f32 %v370_v63, %v1016_v50  ;;  %p823_p3 = por %p822_p2, %p821_p1 }
  0x36   :  { %430 = vperm.xlu1 %779, %v1063_v19   ;;  %v397_v59 = vadd.f32 %v381_v55, %v991_v38  ;;  %v842_v32 = vmov 2  }
  0x37   :  { %v109_v27 = vadd.f32 %v102_v22, %v77_v18  ;;  %754 = vmatmul.mubr.msk.f32.gmra.mrb[6].mxu0 %vm161_vm0, %v152_v20  ;;  %766 = vmatmul.mubr.msk.f32.gmra.mrb[6].mxu1 %vm161_vm0, %v160_v21  ;;  %v401_v0 = vadd.f32 %v385_v26, %v991_v38  ;;  %v402_v2 = vadd.f32 %v386_v1, %v1025_v58  ;;  %p824_p4 = pnand %p823_p3, %p817_p0 }
  0x39   :  { %v371_v30 = vmul.f32 %v355_v23, %v109_v27  ;;  %v375_v41 = vmul.f32 %v359_v36, %v109_v27  ;;  %v379_v51 = vmul.f32 %v363_v48, %v109_v27  ;;  %v383_v60 = vmul.f32 %v367_v57, %v109_v27 }
  0x3a   :  { %440 = vperm.xlu1 %779, %v1069_v31  }
  0x3b   :  { %v387_v37 = vadd.f32 %v371_v30, %v68_v29  ;;  %v391_v45 = vadd.f32 %v375_v41, %v68_v29  ;;  %v395_v53 = vadd.f32 %v379_v51, %v68_v29  ;;  %v399_v62 = vadd.f32 %v383_v60, %v68_v29 }
  0x3d   :  { %405 = vperm.xlu0 %778, %v387_v37  }
  0x3e   :  { %450 = vperm.xlu1 %779, %v396_v34  }
  0x41   :  { %410 = vperm.xlu0 %778, %v388_v40  }
  0x42   :  { %460 = vperm.xlu1 %779, %v398_v42  }
  0x45   :  { %425 = vperm.xlu0 %778, %v391_v45  }
  0x46   :  { %470 = vperm.xlu1 %779, %v400_v47  }
  0x49   :  { %435 = vperm.xlu0 %778, %v393_v49  }
  0x4a   :  { %780 = vset.pattern.permute.xlu1 %v841_v56 }
  0x4b   :  { %532 = vperm.xlu1 %780, %v391_v45  }
  0x4d   :  { %445 = vperm.xlu0 %778, %v395_v53  }
  0x4f   :  { %548 = vperm.xlu1 %780, %v395_v53  }
  0x51   :  { %455 = vperm.xlu0 %778, %v397_v59  }
  0x53   :  { %552 = vperm.xlu1 %780, %v396_v34  }
  0x55   :  { %465 = vperm.xlu0 %778, %v399_v62  }
  0x57   :  { %516 = vperm.xlu1 %780, %v387_v37  }
  0x59   :  { %475 = vperm.xlu0 %778, %v401_v0  }
  0x5b   :  { %520 = vperm.xlu1 %780, %v388_v40  }
  0x5d   :  { %480 = vperm.xlu0 %778, %v402_v2  }
  0x5f   :  { %564 = vperm.xlu1 %780, %v399_v62  }
  0x61   :  { %781 = vset.pattern.permute.xlu0 %v841_v56 }
  0x62   :  { %536 = vperm.xlu0 %781, %v1063_v19  }
  0x63   :  { %568 = vperm.xlu1 %780, %v400_v47  }
  0x66   :  { %540 = vperm.xlu0 %781, %v393_v49  }
  0x67   :  { %524 = vperm.xlu1 %780, %v1020_v54  }
  0x6a   :  { %556 = vperm.xlu0 %781, %v397_v59  }
  0x6b   :  { %572 = vperm.xlu1 %780, %v401_v0  }
  0x6e   :  { %544 = vperm.xlu0 %781, %v1069_v31  }
  0x6f   :  { %528 = vperm.xlu1 %780, %v1036_v4  }
  0x72   :  { %560 = vperm.xlu0 %781, %v398_v42  }
  0x73   :  { %782 = vset.pattern.permute.xlu1 %v842_v32 }
  0x74   :  { %653 = vperm.xlu1 %782, %v391_v45  }
  0x76   :  { %576 = vperm.xlu0 %781, %v402_v2  }
  0x78   :  { %649 = vperm.xlu1 %782, %v387_v37  }
  0x7a   :  { %783 = vset.pattern.permute.xlu0 %v842_v32 }
  0x7b   :  { %657 = vperm.xlu0 %783, %v395_v53  }
  0x7c   :  { %661 = vperm.xlu1 %782, %v399_v62  }
  0xad   :  { %v416_v38 = vpop.permute.xlu1 %415 }
  0xb1   :  { %v421_v50 = vpop.permute.xlu1 %420 }
  0xb5   :  { %v1124_v58 = vpop.permute.xlu1 %430 }
  0xb9   :  { %v1126_v54 = vpop.permute.xlu1 %440 }
  0xbc   :  { %v406_v3 = vpop.permute.xlu0 %405 }
  0xbd   :  { %v451_v5 = vpop.permute.xlu1 %450 }
  0xc0   :  { %v411_v6 = vpop.permute.xlu0 %410 }
  0xc1   :  { %v461_v7 = vpop.permute.xlu1 %460 }
  0xc4   :  { %v1128_v4 = vpop.permute.xlu0 %425 }
  0xc5   :  { %v471_v8 = vpop.permute.xlu1 %470 }
  0xc8   :  { %v1130_v9 = vpop.permute.xlu0 %435 }
  0xca   :  { %v1132_v10 = vpop.permute.xlu1 %532 }
  0xcc   :  { %v446_v11 = vpop.permute.xlu0 %445 }
  0xce   :  { %v549_v13 = vpop.permute.xlu1 %548 }
  0xd0   :  { %v456_v14 = vpop.permute.xlu0 %455 }
  0xd2   :  { %v553_v15 = vpop.permute.xlu1 %552 }
  0xd4   :  { %v466_v16 = vpop.permute.xlu0 %465 }
  0xd6   :  { %v517_v18 = vpop.permute.xlu1 %516 }
  0xd8   :  { %v1134_v12 = vpop.permute.xlu0 %475 }
  0xda   :  { %v521_v17 = vpop.permute.xlu1 %520 }
  0xdc   :  { %v1136_v19 = vpop.permute.xlu0 %480 }
  0xde   :  { %v1138_v20 = vpop.permute.xlu1 %564 }
  0xe1   :  { %v1140_v21 = vpop.permute.xlu0 %536 }
  0xe2   :  { %v1142_v22 = vpop.permute.xlu1 %568 }
  0xe5   :  { %v1144_v31 = vpop.permute.xlu0 %540 }
  0xe6   :  { %v525_v23 = vpop.permute.xlu1 %524 }
  0xe9   :  { %v557_v24 = vpop.permute.xlu0 %556 }
  0xea   :  { %v1146_v36 = vpop.permute.xlu1 %572 }
  0xed   :  { %v1148_v37 = vpop.permute.xlu0 %544 }
  0xee   :  { %v529_v62 = vpop.permute.xlu1 %528 }
  0xf1   :  { %v561_v26 = vpop.permute.xlu0 %560 }
  0xfd   :  { %v746_v25 = vpop.f32.mrb[0].mxu0  ;;  %v758_v27 = vpop.f32.mrb[0].mxu1 }
  0xfe   :  { %v484_v28 = vadd.f32 %v746_v25, %v411_v6  ;;  %v492_v29 = vadd.f32 %v758_v27, %v451_v5  ;;  %v276_v30 = vpop.f32.mrb[1].mxu0  ;;  %v316_v33 = vpop.f32.mrb[1].mxu1 }
  0xff   :  { %v483_v34 = vadd.f32 %v406_v3, %v276_v30  ;;  %v491_v35 = vadd.f32 %v446_v11, %v316_v33 }
 0x100   :  { %v500_v39 = vmax.f32 %v484_v28, 0.0  ;;  %v508_v40 = vmax.f32 %v492_v29, 0.0 }
 0x101   :  { %v499_v41 = vmax.f32 %v483_v34, 0.0  ;;  %v507_v42 = vmax.f32 %v491_v35, 0.0 }
 0x102   :  { %v580_v43 = vmul.f32 %v521_v17, %v500_v39  ;;  %v588_v44 = vmul.f32 %v553_v15, %v508_v40  ;;  %v749_v47 = vpop.f32.mrb[2].mxu0  ;;  %v761_v48 = vpop.f32.mrb[2].mxu1 }
 0x103   :  { %v579_v45 = vmul.f32 %v517_v18, %v499_v41  ;;  %v587_v46 = vmul.f32 %v549_v13, %v507_v42  ;;  %v486_v52 = vadd.f32 %v749_v47, %v421_v50  ;;  %v494_v53 = vadd.f32 %v761_v48, %v461_v7  ;;  %v286_v55 = vpop.f32.mrb[3].mxu0  ;;  %v326_v56 = vpop.f32.mrb[3].mxu1 }
 0x104   :  { %v597_v49 = vsel %vm595_vm1, %v580_v43, 0.0  ;;  %v623_v51 = vsel %vm595_vm1, %v588_v44, 0.0  ;;  %v485_v60 = vadd.f32 %v416_v38, %v286_v55  ;;  %v493_v61 = vadd.f32 %v456_v14, %v326_v56 }
 0x105   :  { %v596_v57 = vsel %vm595_vm1, %v579_v45, 0.0  ;;  %v622_v59 = vsel %vm595_vm1, %v587_v46, 0.0  ;;  %v502_v1 = vmax.f32 %v486_v52, 0.0  ;;  %v510_v2 = vmax.f32 %v494_v53, 0.0 }
 0x106   :  { %v598_v63 = vadd.f32 %v597_v49, %v596_v57  ;;  %v624_v0 = vadd.f32 %v623_v51, %v622_v59  ;;  %v501_v32 = vmax.f32 %v485_v60, 0.0  ;;  %v509_v3 = vmax.f32 %v493_v61, 0.0  ;;  %v752_v5 = vpop.f32.mrb[4].mxu0  ;;  %v764_v6 = vpop.f32.mrb[4].mxu1 }
 0x107   :  { %v582_v50 = vmul.f32 %v529_v62, %v502_v1  ;;  %v590_v7 = vmul.f32 %v561_v26, %v510_v2  ;;  %v488_v11 = vadd.f32 %v752_v5, %v1124_v58  ;;  %v496_v13 = vadd.f32 %v764_v6, %v471_v8  ;;  %v296_v15 = vpop.f32.mrb[5].mxu0  ;;  %v336_v18 = vpop.f32.mrb[5].mxu1 }
 0x108   :  { %v581_v17 = vmul.f32 %v525_v23, %v501_v32  ;;  %v589_v38 = vmul.f32 %v557_v24, %v509_v3  ;;  %v487_v14 = vadd.f32 %v1128_v4, %v296_v15  ;;  %v495_v25 = vadd.f32 %v466_v16, %v336_v18  ;;  %v577_v59 = vpop.permute.xlu0 %576 }
 0x109   :  { %v601_v27 = vsel %vm595_vm1, %v582_v50, 0.0  ;;  %v627_v28 = vsel %vm595_vm1, %v590_v7, 0.0  ;;  %v504_v29 = vmax.f32 %v488_v11, 0.0  ;;  %v512_v30 = vmax.f32 %v496_v13, 0.0  ;;  %v654_v7 = vpop.permute.xlu1 %653 }
 0x10a   :  { %v599_v33 = vsel %vm595_vm1, %v581_v17, 0.0  ;;  %v625_v34 = vsel %vm595_vm1, %v589_v38, 0.0  ;;  %v503_v35 = vmax.f32 %v487_v14, 0.0  ;;  %v511_v58 = vmax.f32 %v495_v25, 0.0  ;;  %v755_v8 = vpop.f32.mrb[6].mxu0  ;;  %v767_v39 = vpop.f32.mrb[6].mxu1 }
 0x10b   :  { %v600_v40 = vadd.f32 %v599_v33, %v598_v63  ;;  %v626_v23 = vadd.f32 %v625_v34, %v624_v0  ;;  %v584_v24 = vmul.f32 %v1140_v21, %v504_v29  ;;  %v592_v4 = vmul.f32 %v1142_v22, %v512_v30  ;;  %v306_v16 = vpop.f32.mrb[7].mxu0  ;;  %v346_v41 = vpop.f32.mrb[7].mxu1 }
 0x10c   :  { %v583_v42 = vmul.f32 %v1132_v10, %v503_v35  ;;  %v591_v43 = vmul.f32 %v1138_v20, %v511_v58  ;;  %v490_v44 = vadd.f32 %v755_v8, %v1126_v54  ;;  %v498_v45 = vadd.f32 %v767_v39, %v1136_v19  ;;  %v658_v34 = vpop.permute.xlu0 %657 }
 0x10d   :  { %v602_v46 = vadd.f32 %v601_v27, %v600_v40  ;;  %v628_v47 = vadd.f32 %v627_v28, %v626_v23  ;;  %v610_v48 = vsel %vm595_vm1, %v584_v24, 0.0  ;;  %v636_v49 = vsel %vm595_vm1, %v592_v4, 0.0  ;;  %v650_v25 = vpop.permute.xlu1 %649 }
 0x10e   :  { %v609_v21 = vsel %vm595_vm1, %v583_v42, 0.0  ;;  %v635_v22 = vsel %vm595_vm1, %v591_v43, 0.0  ;;  %v506_v51 = vmax.f32 %v490_v44, 0.0  ;;  %v514_v52 = vmax.f32 %v498_v45, 0.0 }
 0x10f   :  { %v611_v53 = vadd.f32 %v610_v48, %v609_v21  ;;  %v637_v10 = vadd.f32 %v636_v49, %v635_v22  ;;  %v489_v20 = vadd.f32 %v1130_v9, %v306_v16  ;;  %v497_v54 = vadd.f32 %v1134_v12, %v346_v41 }
 0x110   :  { %v603_v55 = vrot.slane %v602_v46, 4  ;;  %v629_v19 = vrot.slane %v628_v47, 4  ;;  %v586_v61 = vmul.f32 %v1148_v37, %v506_v51  ;;  %v594_v62 = vmul.f32 %v577_v59, %v514_v52 }
 0x111   :  { %v505_v56 = vmax.f32 %v489_v20, 0.0  ;;  %v513_v57 = vmax.f32 %v497_v54, 0.0  ;;  %v662_v23 = vpop.permute.xlu1 %661 }
 0x112   :  { %v630_v60 = vadd.f32 %v629_v19, %v628_v47  ;;  %v604_v0 = vadd.f32 %v603_v55, %v602_v46  ;;  %v614_v3 = vsel %vm595_vm1, %v586_v61, 0.0  ;;  %v640_v5 = vsel %vm595_vm1, %v594_v62, 0.0 }
 0x113   :  { %v585_v26 = vmul.f32 %v1144_v31, %v505_v56  ;;  %v593_v63 = vmul.f32 %v1146_v36, %v513_v57 }
 0x114   :  { %v631_v2 = vrot.slane %v630_v60, 2  ;;  %v605_v37 = vrot.slane %v604_v0, 2 }
 0x115   :  { %v612_v1 = vsel %vm595_vm1, %v585_v26, 0.0  ;;  %v638_v9 = vsel %vm595_vm1, %v593_v63, 0.0 }
 0x116   :  { %v613_v12 = vadd.f32 %v612_v1, %v611_v53  ;;  %v639_v32 = vadd.f32 %v638_v9, %v637_v10  ;;  %v632_v11 = vadd.f32 %v631_v2, %v630_v60  ;;  %v606_v15 = vadd.f32 %v605_v37, %v604_v0 }
 0x118   :  { %v615_v6 = vadd.f32 %v614_v3, %v613_v12  ;;  %v641_v50 = vadd.f32 %v640_v5, %v639_v32  ;;  %v633_v17 = vrot.slane %v632_v11, 1  ;;  %v607_v28 = vrot.slane %v606_v15, 1 }
 0x11a   :  { %v616_v31 = vrot.slane %v615_v6, 4  ;;  %v642_v13 = vrot.slane %v641_v50, 4  ;;  %v634_v30 = vadd.f32 %v633_v17, %v632_v11  ;;  %v608_v8 = vadd.f32 %v607_v28, %v606_v15 }
 0x11c   :  { %v617_v36 = vadd.f32 %v616_v31, %v615_v6  ;;  %v643_v18 = vadd.f32 %v642_v13, %v641_v50  ;;  %v666_v40 = vadd.f32 %v658_v34, %v634_v30  ;;  %v664_v41 = vadd.f32 %v650_v25, %v608_v8 }
 0x11e   :  { %v618_v38 = vrot.slane %v617_v36, 2  ;;  %v644_v14 = vrot.slane %v643_v18, 2  ;;  %v675_v42 = vrot.slane %v666_v40, 6 }
 0x120   :  { %v619_v27 = vadd.f32 %v618_v38, %v617_v36  ;;  %v645_v29 = vadd.f32 %v644_v14, %v643_v18 }
 0x122   :  { %v620_v33 = vrot.slane %v619_v27, 1  ;;  %v646_v35 = vrot.slane %v645_v29, 1 }
 0x124   :  { %v621_v58 = vadd.f32 %v620_v33, %v619_v27  ;;  %v647_v39 = vadd.f32 %v646_v35, %v645_v29 }
 0x126   :  { %v665_v24 = vadd.f32 %v654_v7, %v621_v58  ;;  %v667_v4 = vadd.f32 %v662_v23, %v647_v39 }
 0x128   :  { %v672_v16 = vrot.slane %v665_v24, 7  ;;  %v678_v44 = vrot.slane %v667_v4, 5 }
 0x12a   :  { %v674_v43 = vsel %vm673_vm2, %v672_v16, %v664_v41 }
 0x12b   :  { %v677_v45 = vsel %vm676_vm3, %v675_v42, %v674_v43 }
 0x12c   :  { %v680_v46 = vsel %vm679_vm4, %v678_v44, %v677_v45 }
 0x12d   :  { %683 = vst.msk [vmem:[#allocation2] sm:$0xf] %vm682_vm5, %v680_v46 }
 0x12e   :  { %827 = shalt.err (!%p824_p4)
}
 0x12f   :  { %s828_s13 = scalar_lea.hbm %s1196_s5, 64 }
 0x130   :  { %p829_p5 = scmp.ne.s32.totalorder %s1196_s5, %s828_s13  ;;  %p832_p6 = scmp.lt.u32.totalorder %s828_s13, %s1196_s5 }
 0x132   :  { %p834_p7 = pnand %p832_p6, %p829_p5 }
 0x134   :  { %837 = shalt.err (!%p834_p7)
}
 0x135   :  { %693 = dma.vmem_to_hbm [thread:$0]  %s691_s10, 64, %s1196_s5, [#allocation3]  }
 0x136   :  { %838 = dma.done.wait [#allocation3], 64  }
 0x137   :  { %839 = vsyncadd [#allocation3], 4294967232 }
 0x138   :  { %697 = vsyncpa [#allocation3], 1 }

</bundles_post_ra>
